<compile_context>
chip_gen: v5e
topology: v5e:2x2
jax: 0.10.0
libtpu: 0.0.40
codegen_flags: <defaults>
</compile_context>

<pallas_src>
import jax
import jax.numpy as jnp
from jax.experimental import pallas as pl
from jax.experimental.pallas import tpu as pltpu


def _round_up(x, m):
    return (x + m - 1) // m * m


def _ffn_kernel(x_ref, w1_ref, b1_ref, w2_ref, b2_ref, o_ref, acc_ref):
    # grid = (row_tiles, d_ff_slabs); axis 1 is the d_ff reduction.
    k = pl.program_id(1)

    @pl.when(k == 0)
    def _():
        acc_ref[...] = jnp.zeros_like(acc_ref)

    x = x_ref[...]
    # First linear on this d_ff slab (MXU, f32 accumulation) + bias + ReLU in f32.
    h = jnp.dot(x, w1_ref[...], preferred_element_type=jnp.float32)
    h = jnp.maximum(h + b1_ref[...], 0.0)
    # dropout == identity in eval mode.
    # Second linear: accumulate the (tm, d_model) partial product in f32.
    # (h is downcast to the compute dtype between matmuls — one rounding step.)
    acc_ref[...] += jnp.dot(h.astype(w2_ref.dtype), w2_ref[...],
                            preferred_element_type=jnp.float32)

    @pl.when(k == pl.num_programs(1) - 1)
    def _():
        o_ref[...] = (acc_ref[...] + b2_ref[...]).astype(o_ref.dtype)


def positionwise_feed_forward(x, w1, b1, w2, b2, *, tm=256, tf=None,
                              compute_dtype=None):
    """x: (batch, seq, d_model). Weights stored as (in_features, out_features).

    compute_dtype: dtype fed to the MXU (e.g. jnp.bfloat16). Accumulation is
    always f32; output keeps x.dtype.
    """
    batch, seq, d_model = x.shape
    d_ff = w1.shape[1]
    out_dtype = x.dtype
    compute_dtype = compute_dtype or x.dtype

    M = batch * seq
    # Lane-align feature dims (multiples of 128); sublane-align / clamp row tile.
    d_model_p = _round_up(d_model, 128)
    if tf is None:
        tf = min(_round_up(d_ff, 128), 2048)
    d_ff_p = _round_up(d_ff, tf)
    tm = min(tm, _round_up(M, 32))          # keep default 256, shrink for tiny M
    M_p = _round_up(M, tm)

    # Pad + cast operands (zero padding is numerically exact, see header).
    x2d = jnp.pad(x.reshape(M, d_model),
                  ((0, M_p - M), (0, d_model_p - d_model))).astype(compute_dtype)
    w1_p = jnp.pad(w1, ((0, d_model_p - d_model), (0, d_ff_p - d_ff))).astype(compute_dtype)
    w2_p = jnp.pad(w2, ((0, d_ff_p - d_ff), (0, d_model_p - d_model))).astype(compute_dtype)
    b1_p = jnp.pad(b1, (0, d_ff_p - d_ff)).astype(jnp.float32).reshape(1, d_ff_p)
    b2_p = jnp.pad(b2, (0, d_model_p - d_model)).astype(jnp.float32).reshape(1, d_model_p)

    grid = (M_p // tm, d_ff_p // tf)
    itemsize = jnp.dtype(compute_dtype).itemsize

    # Rough per-step VMEM: double-buffered x/out tiles + weight slabs,
    # f32 accumulator, f32 intermediate h.
    est = (2 * 2 * tm * d_model_p * itemsize
           + 2 * 2 * d_model_p * tf * itemsize
           + 2 * 8 * (tf + d_model_p) * 4
           + tm * d_model_p * 4
           + tm * tf * 4)
    vmem_limit = int(min(max(2 * est, 32 * 2**20), 48 * 2**20))

    cost = pl.CostEstimate(
        flops=4 * M_p * d_model_p * d_ff_p,          # two matmuls, 2 flops/MAC
        transcendentals=0,
        bytes_accessed=int(x2d.nbytes
                           + M_p * d_model_p * jnp.dtype(out_dtype).itemsize
                           + grid[0] * (w1_p.nbytes + w2_p.nbytes
                                        + b1_p.nbytes + b2_p.nbytes)),
    )

    out2d = pl.pallas_call(
        _ffn_kernel,
        out_shape=jax.ShapeDtypeStruct((M_p, d_model_p), out_dtype),
        grid_spec=pltpu.PrefetchScalarGridSpec(
            num_scalar_prefetch=0,
            grid=grid,
            in_specs=[
                pl.BlockSpec((tm, d_model_p), lambda i, k: (i, 0)),   # x row tile
                pl.BlockSpec((d_model_p, tf), lambda i, k: (0, k)),   # W1 column slab
                pl.BlockSpec((1, tf),         lambda i, k: (0, k)),   # b1 slab
                pl.BlockSpec((tf, d_model_p), lambda i, k: (k, 0)),   # W2 row slab
                pl.BlockSpec((1, d_model_p),  lambda i, k: (0, 0)),   # b2
            ],
            out_specs=pl.BlockSpec((tm, d_model_p), lambda i, k: (i, 0)),
            scratch_shapes=[pltpu.VMEM((tm, d_model_p), jnp.float32)],
        ),
        compiler_params=pltpu.CompilerParams(
            dimension_semantics=("parallel", "arbitrary"),
            vmem_limit_bytes=vmem_limit),
        cost_estimate=cost,
    )(x2d, w1_p, b1_p, w2_p, b2_p)

    return out2d[:M, :d_model].reshape(batch, seq, d_model)


def init_params(key, d_model, d_ff, dtype=jnp.float32):
    """Deterministic init mimicking nn.Linear default (uniform +-1/sqrt(fan_in)).
    Weights are stored as (in_features, out_features)."""
    k1, k2, k3, k4 = jax.random.split(key, 4)
    bound1 = 1.0 / (d_model ** 0.5)
    bound2 = 1.0 / (d_ff ** 0.5)
    w1 = jax.random.uniform(k1, (d_model, d_ff), dtype, -bound1, bound1)
    b1 = jax.random.uniform(k2, (d_ff,), dtype, -bound1, bound1)
    w2 = jax.random.uniform(k3, (d_ff, d_model), dtype, -bound2, bound2)
    b2 = jax.random.uniform(k4, (d_model,), dtype, -bound2, bound2)
    return w1, b1, w2, b2


if __name__ == "__main__":
    batch, seq, d_model, d_ff = 2, 8, 32, 64

    key = jax.random.PRNGKey(0)
    kx, kp = jax.random.split(key)
    x = jax.random.normal(kx, (batch, seq, d_model), jnp.float32)
    w1, b1, w2, b2 = init_params(kp, d_model, d_ff)

    # pure-JAX reference
    ref = jnp.maximum(x @ w1 + b1, 0.0) @ w2 + b2

    # f32 path (exact check)
    y = jax.block_until_ready(positionwise_feed_forward(x, w1, b1, w2, b2))
    assert y.shape == (batch, seq, d_model)
    assert jnp.allclose(y, ref, atol=1e-5, rtol=1e-5)

    # bf16-operand path (MXU-friendly, f32 accumulation) — loose tolerance
    y_bf = jax.block_until_ready(
        positionwise_feed_forward(x, w1, b1, w2, b2, compute_dtype=jnp.bfloat16))
    assert y_bf.shape == (batch, seq, d_model)
    assert bool(jnp.all(jnp.isfinite(y_bf.astype(jnp.float32))))
    assert jnp.allclose(y_bf.astype(jnp.float32), ref, atol=1e-1, rtol=1e-1)

    print("KERNEL_OK")
</pallas_src>

<mosaic_0001>
module attributes {stable_mosaic.version = 11 : i64} {
  func.func @_ffn_kernel(%arg0: i32, %arg1: i32, %arg2: memref<32x128xf32, #tpu.memory_space<vmem>>, %arg3: memref<128x128xf32, #tpu.memory_space<vmem>>, %arg4: memref<1x128xf32, #tpu.memory_space<vmem>>, %arg5: memref<128x128xf32, #tpu.memory_space<vmem>>, %arg6: memref<1x128xf32, #tpu.memory_space<vmem>>, %arg7: memref<32x128xf32, #tpu.memory_space<vmem>>, %arg8: memref<32x128xf32, #tpu.memory_space<vmem>>) attributes {dimension_semantics = [#tpu.dimension_semantics<parallel>, #tpu.dimension_semantics<arbitrary>], iteration_bounds = array<i64: 1, 1>, scalar_prefetch = 0 : i64, scratch_operands = 1 : i64, tpu.core_type = #tpu.core_type<tc>, window_params = [{transform_indices = @transform_0, window_bounds = array<i64: 32, 128>}, {transform_indices = @transform_1, window_bounds = array<i64: 128, 128>}, {transform_indices = @transform_2, window_bounds = array<i64: 1, 128>}, {transform_indices = @transform_3, window_bounds = array<i64: 128, 128>}, {pipeline_mode = #tpu.pipeline_mode<synchronous>, transform_indices = @transform_4, window_bounds = array<i64: 1, 128>}, {transform_indices = @transform_5, window_bounds = array<i64: 32, 128>}]} {
    %c0_i32 = arith.constant 0 : i32
    %0 = arith.cmpi eq, %arg1, %c0_i32 : i32
    %1 = arith.extui %0 : i1 to i32
    %c0_i32_0 = arith.constant 0 : i32
    %2 = arith.cmpi ne, %1, %c0_i32_0 : i32
    scf.if %2 {
      %cst_16 = arith.constant 0.000000e+00 : f32
      %19 = vector.broadcast %cst_16 : f32 to vector<32x128xf32>
      %c0_17 = arith.constant 0 : index
      %c0_18 = arith.constant 0 : index
      %20 = vector.load %arg8[%c0_17, %c0_18] : memref<32x128xf32, #tpu.memory_space<vmem>>, vector<32x128xf32>
      tpu.vector_store %arg8[%c0_17, %c0_18], %19 {strides = array<i32>} : memref<32x128xf32, #tpu.memory_space<vmem>>, vector<32x128xf32>,
    } else {
    }
    %c0 = arith.constant 0 : index
    %c0_1 = arith.constant 0 : index
    %3 = vector.load %arg2[%c0, %c0_1] : memref<32x128xf32, #tpu.memory_space<vmem>>, vector<32x128xf32>
    %c0_2 = arith.constant 0 : index
    %c0_3 = arith.constant 0 : index
    %4 = vector.load %arg3[%c0_2, %c0_3] : memref<128x128xf32, #tpu.memory_space<vmem>>, vector<128x128xf32>
    %cst = arith.constant dense<0.000000e+00> : vector<32x128xf32>
    %5 = tpu.matmul %3, %4, %cst {dimension_numbers = #tpu.dot_dimension_numbers<[1], [0], [0], [1], [0, 0, 1, 1], [], []>} : vector<32x128xf32>, vector<128x128xf32>, vector<32x128xf32> -> vector<32x128xf32>
    %c0_4 = arith.constant 0 : index
    %c0_5 = arith.constant 0 : index
    %6 = vector.load %arg4[%c0_4, %c0_5] : memref<1x128xf32, #tpu.memory_space<vmem>>, vector<1x128xf32>
    %7 = vector.broadcast %6 : vector<1x128xf32> to vector<32x128xf32>
    %8 = arith.addf %5, %7 : vector<32x128xf32>
    %cst_6 = arith.constant 0.000000e+00 : f32
    %9 = vector.broadcast %cst_6 : f32 to vector<32x128xf32>
    %10 = arith.maximumf %8, %9 : vector<32x128xf32>
    %c0_7 = arith.constant 0 : index
    %c0_8 = arith.constant 0 : index
    %11 = vector.load %arg8[%c0_7, %c0_8] : memref<32x128xf32, #tpu.memory_space<vmem>>, vector<32x128xf32>
    %c0_9 = arith.constant 0 : index
    %c0_10 = arith.constant 0 : index
    %12 = vector.load %arg5[%c0_9, %c0_10] : memref<128x128xf32, #tpu.memory_space<vmem>>, vector<128x128xf32>
    %cst_11 = arith.constant dense<0.000000e+00> : vector<32x128xf32>
    %13 = tpu.matmul %10, %12, %cst_11 {dimension_numbers = #tpu.dot_dimension_numbers<[1], [0], [0], [1], [0, 0, 1, 1], [], []>} : vector<32x128xf32>, vector<128x128xf32>, vector<32x128xf32> -> vector<32x128xf32>
    %14 = arith.addf %11, %13 : vector<32x128xf32>
    %c0_12 = arith.constant 0 : index
    %c0_13 = arith.constant 0 : index
    %15 = vector.load %arg8[%c0_12, %c0_13] : memref<32x128xf32, #tpu.memory_space<vmem>>, vector<32x128xf32>
    tpu.vector_store %arg8[%c0_12, %c0_13], %14 {strides = array<i32>} : memref<32x128xf32, #tpu.memory_space<vmem>>, vector<32x128xf32>,
    %c0_i32_14 = arith.constant 0 : i32
    %16 = arith.cmpi eq, %arg1, %c0_i32_14 : i32
    %17 = arith.extui %16 : i1 to i32
    %c0_i32_15 = arith.constant 0 : i32
    %18 = arith.cmpi ne, %17, %c0_i32_15 : i32
    scf.if %18 {
      %c0_16 = arith.constant 0 : index
      %c0_17 = arith.constant 0 : index
      %19 = vector.load %arg8[%c0_16, %c0_17] : memref<32x128xf32, #tpu.memory_space<vmem>>, vector<32x128xf32>
      %c0_18 = arith.constant 0 : index
      %c0_19 = arith.constant 0 : index
      %20 = vector.load %arg6[%c0_18, %c0_19] : memref<1x128xf32, #tpu.memory_space<vmem>>, vector<1x128xf32>
      %21 = vector.broadcast %20 : vector<1x128xf32> to vector<32x128xf32>
      %22 = arith.addf %19, %21 : vector<32x128xf32>
      %c0_20 = arith.constant 0 : index
      %c0_21 = arith.constant 0 : index
      %23 = vector.load %arg7[%c0_20, %c0_21] : memref<32x128xf32, #tpu.memory_space<vmem>>, vector<32x128xf32>
      tpu.vector_store %arg7[%c0_20, %c0_21], %22 {strides = array<i32>} : memref<32x128xf32, #tpu.memory_space<vmem>>, vector<32x128xf32>,
    } else {
    }
    return
  }
  func.func @transform_0(%arg0: i32, %arg1: i32) -> (i32, i32) {
    %c0_i32 = arith.constant 0 : i32
    %c0_i32_0 = arith.constant 0 : i32
    return %arg0, %c0_i32 : i32, i32
  }
  func.func @transform_1(%arg0: i32, %arg1: i32) -> (i32, i32) {
    %c0_i32 = arith.constant 0 : i32
    %c0_i32_0 = arith.constant 0 : i32
    return %c0_i32, %arg1 : i32, i32
  }
  func.func @transform_2(%arg0: i32, %arg1: i32) -> (i32, i32) {
    %c0_i32 = arith.constant 0 : i32
    %c0_i32_0 = arith.constant 0 : i32
    return %c0_i32, %arg1 : i32, i32
  }
  func.func @transform_3(%arg0: i32, %arg1: i32) -> (i32, i32) {
    %c0_i32 = arith.constant 0 : i32
    %c0_i32_0 = arith.constant 0 : i32
    return %arg1, %c0_i32 : i32, i32
  }
  func.func @transform_4(%arg0: i32, %arg1: i32) -> (i32, i32) {
    %c0_i32 = arith.constant 0 : i32
    %c0_i32_0 = arith.constant 0 : i32
    %c0_i32_1 = arith.constant 0 : i32
    return %c0_i32, %c0_i32_0 : i32, i32
  }
  func.func @transform_5(%arg0: i32, %arg1: i32) -> (i32, i32) {
    %c0_i32 = arith.constant 0 : i32
    %c0_i32_0 = arith.constant 0 : i32
    return %arg0, %c0_i32 : i32, i32
  }
}

</mosaic_0001>

<bundles_post_ra>
// kernel: tpu_custom_call.1
= control target key start
LH: loop header
LB: loop body
LE: loop exit
PB: predicated region body
PF: predicated region fallthrough
CT: control target
= control target key end

     0   :  { %10 = vsyncpa [#allocation4], 0  ;;  %s437_s0 = inlined_call_operand.hbm [shape: f32[32,128], index: 0, kind: input, shape index: {}]   ;;  %s438_s1 = inlined_call_operand.hbm [shape: f32[128,128], index: 1, kind: input, shape index: {}]   ;;  %s439_s2 = inlined_call_operand.vmem [shape: f32[1,128], index: 2, kind: input, shape index: {}]   ;;  %s440_s3 = inlined_call_operand.hbm [shape: f32[128,128], index: 3, kind: input, shape index: {}]   ;;  %s441_s4 = inlined_call_operand.vmem [shape: f32[1,128], index: 4, kind: input, shape index: {}]   ;;  %s442_s5 = inlined_call_operand.hbm [shape: f32[32,128], index: 5, kind: output, shape index: {}]  }
   0x1   :  { %11 = vsyncpa [#allocation7], 0 }
   0x2   :  { %12 = vsyncpa [#allocation5], 0  ;;  %s30_s20 = sshll.u32 %s438_s1, 4  ;;  %s371_s21 = smov [#allocation6]   ;;  %s31_s20 = int_to_ptr.hbm [resolvable:$true] %s30_s20 }
   0x3   :  { %s32_s22 = sshll.u32 %s371_s21, 4  ;;  %s17_s25 = sshll.u32 %s437_s0, 4  ;;  %s33_s22 = int_to_ptr.vmem [resolvable:$true] %s32_s22  ;;  %s18_s25 = int_to_ptr.hbm [resolvable:$true] %s17_s25 }
   0x4   :  { %s372_s26 = smov 128   ;;  %s373_s27 = smov 8  }
   0x5   :  { %38 = dma.hbm_to_vmem [thread:$0]  %s31_s20, 2048, %s33_s22, [#allocation7], %s372_s26, %s372_s26, %s373_s27  }
   0x6   :  { %s374_s28 = smov [#allocation3]   ;;  %s45_s1 = sshll.u32 %s440_s3, 4  ;;  %s46_s1 = int_to_ptr.hbm [resolvable:$true] %s45_s1 }
   0x7   :  { %s19_s29 = sshll.u32 %s374_s28, 4  ;;  %s375_s0 = smov [#allocation8]   ;;  %s20_s29 = int_to_ptr.vmem [resolvable:$true] %s19_s29 }
   0x8   :  { %25 = dma.hbm_to_vmem [thread:$0]  %s18_s25, 512, %s20_s29, [#allocation4], %s372_s26, %s372_s26, %s373_s27  }
   0x9   :  { %s47_s7 = sshll.u32 %s375_s0, 4  ;;  %s48_s7 = int_to_ptr.vmem [resolvable:$true] %s47_s7 }
   0xa   :  { %53 = dma.hbm_to_vmem [thread:$0]  %s46_s1, 2048, %s48_s7, [#allocation7], %s372_s26, %s372_s26, %s373_s27  }
   0xb   :  { %365 = dma.done.wait [#allocation4], 512  }
   0xc   :  { %366 = vsyncadd [#allocation4], 4294966784 }
   0xd   :  { %367 = dma.done.wait [#allocation7], 4096  }
   0xe   :  { %368 = vsyncadd [#allocation7], 4294963200  ;;  %v95_v0 = vld [vmem:[#allocation6 + $0x78] sm:$0xff]  ;;  %v94_v1 = vld [vmem:[#allocation6 + $0x70] sm:$0xff]  ;;  %s215_s14 = sshll.u32 %s442_s5, 4  ;;  %s216_s14 = int_to_ptr.hbm [resolvable:$true] %s215_s14 }
   0xf   :  { %229 = vmatpush.msra.mxu2 %v95_v0  ;;  %100 = vmatpush.msra.mxu0 %v95_v0  ;;  %v93_v2 = vld [vmem:[#allocation6 + $0x68] sm:$0xff]  ;;  %v92_v3 = vld [vmem:[#allocation6 + $0x60] sm:$0xff]  ;;  %v91_v4 = vld [vmem:[#allocation6 + $0x58] sm:$0xff] }
  0x10   :  { %v90_v5 = vld [vmem:[#allocation6 + $0x50] sm:$0xff]  ;;  %v152_v6 = vld [vmem:[#allocation8 + $0x78] sm:$0xff]  ;;  %v89_v8 = vld [vmem:[#allocation6 + $0x48] sm:$0xff] }
  0x11   :  { %230 = vmatpush.msra.mxu2 %v94_v1  ;;  %101 = vmatpush.msra.mxu0 %v94_v1  ;;  %v151_v7 = vld [vmem:[#allocation8 + $0x70] sm:$0xff]  ;;  %v150_v9 = vld [vmem:[#allocation8 + $0x68] sm:$0xff]  ;;  %v88_v10 = vld [vmem:[#allocation6 + $0x40] sm:$0xff] }
  0x12   :  { %245 = vmatpush.msra.mxu3 %v152_v6  ;;  %153 = vmatpush.msra.mxu1 %v152_v6  ;;  %v149_v11 = vld [vmem:[#allocation8 + $0x60] sm:$0xff]  ;;  %v87_v12 = vld [vmem:[#allocation6 + $0x38] sm:$0xff]  ;;  %v86_v14 = vld [vmem:[#allocation6 + $0x30] sm:$0xff] }
  0x13   :  { %231 = vmatpush.msra.mxu2 %v93_v2  ;;  %102 = vmatpush.msra.mxu0 %v93_v2  ;;  %v148_v13 = vld [vmem:[#allocation8 + $0x58] sm:$0xff]  ;;  %v147_v15 = vld [vmem:[#allocation8 + $0x50] sm:$0xff]  ;;  %v85_v16 = vld [vmem:[#allocation6 + $0x28] sm:$0xff] }
  0x14   :  { %246 = vmatpush.msra.mxu3 %v151_v7  ;;  %154 = vmatpush.msra.mxu1 %v151_v7  ;;  %v146_v17 = vld [vmem:[#allocation8 + $0x48] sm:$0xff]  ;;  %v84_v18 = vld [vmem:[#allocation6 + $0x20] sm:$0xff]  ;;  %v83_v20 = vld [vmem:[#allocation6 + $0x18] sm:$0xff] }
  0x15   :  { %232 = vmatpush.msra.mxu2 %v92_v3  ;;  %103 = vmatpush.msra.mxu0 %v92_v3  ;;  %v145_v19 = vld [vmem:[#allocation8 + $0x40] sm:$0xff]  ;;  %v144_v21 = vld [vmem:[#allocation8 + $0x38] sm:$0xff]  ;;  %v82_v22 = vld [vmem:[#allocation6 + $0x10] sm:$0xff] }
  0x16   :  { %247 = vmatpush.msra.mxu3 %v150_v9  ;;  %155 = vmatpush.msra.mxu1 %v150_v9  ;;  %v143_v23 = vld [vmem:[#allocation8 + $0x30] sm:$0xff]  ;;  %v81_v24 = vld [vmem:[#allocation6 + $0x8] sm:$0xff]  ;;  %v80_v26 = vld [vmem:[#allocation6] sm:$0xff] }
  0x17   :  { %233 = vmatpush.msra.mxu2 %v91_v4  ;;  %104 = vmatpush.msra.mxu0 %v91_v4  ;;  %v142_v25 = vld [vmem:[#allocation8 + $0x28] sm:$0xff]  ;;  %v78_v27 = vld [vmem:[#allocation3 + $0x10] sm:$0xff]  ;;  %v76_v28 = vld [vmem:[#allocation3] sm:$0xff] }
  0x18   :  { %248 = vmatpush.msra.mxu3 %v149_v11  ;;  %156 = vmatpush.msra.mxu1 %v149_v11  ;;  %v141_v29 = vld [vmem:[#allocation8 + $0x20] sm:$0xff]  ;;  %v140_v30 = vld [vmem:[#allocation8 + $0x18] sm:$0xff]  ;;  %v77_v32 = vld [vmem:[#allocation3 + $0x8] sm:$0xff] }
  0x19   :  { %234 = vmatpush.msra.mxu2 %v90_v5  ;;  %105 = vmatpush.msra.mxu0 %v90_v5  ;;  %v79_v31 = vld [vmem:[#allocation3 + $0x18] sm:$0xff]  ;;  %v139_v33 = vld [vmem:[#allocation8 + $0x10] sm:$0xff]  ;;  %v138_v34 = vld [vmem:[#allocation8 + $0x8] sm:$0xff] }
  0x1a   :  { %249 = vmatpush.msra.mxu3 %v148_v13  ;;  %157 = vmatpush.msra.mxu1 %v148_v13  ;;  %v137_v35 = vld [vmem:[#allocation8] sm:$0xff] }
  0x1b   :  { %235 = vmatpush.msra.mxu2 %v89_v8  ;;  %106 = vmatpush.msra.mxu0 %v89_v8  ;;  %v267_v36 = vld [vmem:[%s439_s2] ss:$0 sm:$0xff]  ;;  %s376_s2 = smov [#allocation9]  }
  0x1c   :  { %250 = vmatpush.msra.mxu3 %v147_v15  ;;  %158 = vmatpush.msra.mxu1 %v147_v15  ;;  %v268_v49 = vld [vmem:[%s441_s4] ss:$0 sm:$0xff]  ;;  %s213_s11 = sshll.u32 %s376_s2, 4  ;;  %s214_s11 = int_to_ptr.vmem [resolvable:$true] %s213_s11 }
  0x1d   :  { %236 = vmatpush.msra.mxu2 %v88_v10  ;;  %107 = vmatpush.msra.mxu0 %v88_v10 }
  0x1e   :  { %251 = vmatpush.msra.mxu3 %v146_v17  ;;  %159 = vmatpush.msra.mxu1 %v146_v17 }
  0x1f   :  { %237 = vmatpush.msra.mxu2 %v87_v12  ;;  %108 = vmatpush.msra.mxu0 %v87_v12 }
  0x20   :  { %252 = vmatpush.msra.mxu3 %v145_v19  ;;  %160 = vmatpush.msra.mxu1 %v145_v19 }
  0x21   :  { %238 = vmatpush.msra.mxu2 %v86_v14  ;;  %109 = vmatpush.msra.mxu0 %v86_v14 }
  0x22   :  { %253 = vmatpush.msra.mxu3 %v144_v21  ;;  %161 = vmatpush.msra.mxu1 %v144_v21 }
  0x23   :  { %239 = vmatpush.msra.mxu2 %v85_v16  ;;  %110 = vmatpush.msra.mxu0 %v85_v16 }
  0x24   :  { %254 = vmatpush.msra.mxu3 %v143_v23  ;;  %162 = vmatpush.msra.mxu1 %v143_v23 }
  0x25   :  { %240 = vmatpush.msra.mxu2 %v84_v18  ;;  %111 = vmatpush.msra.mxu0 %v84_v18 }
  0x26   :  { %255 = vmatpush.msra.mxu3 %v142_v25  ;;  %163 = vmatpush.msra.mxu1 %v142_v25 }
  0x27   :  { %241 = vmatpush.msra.mxu2 %v83_v20  ;;  %112 = vmatpush.msra.mxu0 %v83_v20 }
  0x28   :  { %256 = vmatpush.msra.mxu3 %v141_v29  ;;  %164 = vmatpush.msra.mxu1 %v141_v29 }
  0x29   :  { %242 = vmatpush.msra.mxu2 %v82_v22  ;;  %113 = vmatpush.msra.mxu0 %v82_v22 }
  0x2a   :  { %257 = vmatpush.msra.mxu3 %v140_v30  ;;  %165 = vmatpush.msra.mxu1 %v140_v30 }
  0x2b   :  { %243 = vmatpush.msra.mxu2 %v81_v24  ;;  %114 = vmatpush.msra.mxu0 %v81_v24 }
  0x2c   :  { %258 = vmatpush.msra.mxu3 %v139_v33  ;;  %166 = vmatpush.msra.mxu1 %v139_v33 }
  0x2d   :  { %244 = vmatpush.msra.mxu2 %v80_v26  ;;  %115 = vmatpush.msra.mxu0 %v80_v26 }
  0x2e   :  { %122 = vmatmul.f32.vlgmr.msra.gmra.mxu2 %v78_v27  ;;  %116 = vmatmul.f32.vlgmr.msra.gmra.mxu0 %v76_v28 }
  0x2f   :  { %259 = vmatpush.msra.mxu3 %v138_v34  ;;  %167 = vmatpush.msra.mxu1 %v138_v34 }
  0x31   :  { %260 = vmatpush.msra.mxu3 %v137_v35  ;;  %168 = vmatpush.msra.mxu1 %v137_v35 }
  0x36   :  { %125 = vmatmul.f32.gmra.mxu2 %v79_v31  ;;  %119 = vmatmul.f32.gmra.mxu0 %v77_v32 }
  0xab   :  { %v117_v37 = vpop.f32.mrf.mxu0 }
  0xac   :  { %v118_v38 = vadd.f32 %v267_v36, %v117_v37 }
  0xae   :  { %v129_v39 = vmax.f32 %v118_v38, 0.0 }
  0xb0   :  { %169 = vmatmul.f32.vlgmr.msra.gmra.mxu1 %v129_v39 }
  0xb1   :  { %v123_v40 = vpop.f32.mrf.mxu2 }
  0xb2   :  { %v124_v41 = vadd.f32 %v267_v36, %v123_v40 }
  0xb3   :  { %v120_v42 = vpop.f32.mrf.mxu0 }
  0xb4   :  { %v131_v43 = vmax.f32 %v124_v41, 0.0  ;;  %v121_v44 = vadd.f32 %v267_v36, %v120_v42 }
  0xb6   :  { %175 = vmatmul.f32.vlgmr.msra.gmra.mxu3 %v131_v43  ;;  %v130_v45 = vmax.f32 %v121_v44, 0.0 }
  0xb8   :  { %172 = vmatmul.f32.gmra.mxu1 %v130_v45 }
  0xb9   :  { %v126_v46 = vpop.f32.mrf.mxu2 }
  0xba   :  { %v127_v47 = vadd.f32 %v267_v36, %v126_v46 }
  0xbc   :  { %v132_v48 = vmax.f32 %v127_v47, 0.0 }
  0xbe   :  { %178 = vmatmul.f32.gmra.mxu3 %v132_v48 }
 0x12d   :  { %v170_v50 = vpop.f32.mrf.mxu1 }
 0x12e   :  { %v201_v51 = vadd.f32 %v268_v49, %v170_v50 }
 0x130   :  { %205 = vst [vmem:[#allocation9] sm:$0xff] %v201_v51 }
 0x135   :  { %v173_v52 = vpop.f32.mrf.mxu1 }
 0x136   :  { %v202_v53 = vadd.f32 %v268_v49, %v173_v52 }
 0x138   :  { %206 = vst [vmem:[#allocation9 + $0x8] sm:$0xff] %v202_v53 }
 0x139   :  { %v176_v54 = vpop.f32.mrf.mxu3 }
 0x13a   :  { %v203_v55 = vadd.f32 %v268_v49, %v176_v54 }
 0x13c   :  { %207 = vst [vmem:[#allocation9 + $0x10] sm:$0xff] %v203_v55 }
 0x141   :  { %v179_v56 = vpop.f32.mrf.mxu3 }
 0x142   :  { %v204_v57 = vadd.f32 %v268_v49, %v179_v56 }
 0x144   :  { %208 = vst [vmem:[#allocation9 + $0x18] sm:$0xff] %v204_v57 }
 0x145   :  { %221 = dma.vmem_to_hbm [thread:$0]  %s214_s11, 512, %s216_s14, [#allocation5], %s372_s26, %s372_s26, %s373_s27  }
 0x146   :  { %369 = dma.done.wait [#allocation5], 512  }
 0x147   :  { %370 = vsyncadd [#allocation5], 4294966784 }
 0x148   :  { %226 = vsyncpa [#allocation4], 1 }
 0x149   :  { %227 = vsyncpa [#allocation7], 1 }
 0x14a   :  { %228 = vsyncpa [#allocation5], 1 }

</bundles_post_ra>
